<compile_context>
chip_gen: v7x
topology: tpu7x:2x2x1
jax: 0.10.0
libtpu: 0.0.40
codegen_flags: <defaults>
</compile_context>

<pallas_src>
import jax
import jax.numpy as jnp
from jax import lax
from jax.experimental import pallas as pl
from jax.experimental.pallas import tpu as pltpu


def _loglinear_kernel(x_ref, w_ref, b_ref, o_ref):
    # x_ref: (TB, D) VMEM  -- one batch tile (last tile may hold garbage rows
    #                         past B; the wrapper slices those lanes off)
    # w_ref: (1, D)  VMEM  -- weight row, resident across all grid steps
    # b_ref: (1, 1)  SMEM  -- bias scalar
    # o_ref: (1, TB) VMEM  -- lane-dense output row for this tile
    acc = lax.dot_general(
        w_ref[...], x_ref[...],
        dimension_numbers=(((1,), (1,)), ((), ())),   # contract the D axis
        preferred_element_type=jnp.float32,
    )                                                 # (1, TB), lane-dense
    o_ref[...] = (acc + b_ref[0, 0]).astype(o_ref.dtype)


def _round_up(x, m):
    return ((x + m - 1) // m) * m


def _vmem_limit_bytes():
    # Conservative default = v7x per-TC physical VMEM (64 MiB); use half of
    # whatever the chip actually has, clamped to [16 MiB, 64 MiB].
    cap = 64 * 1024 * 1024
    try:
        info = pltpu.get_tpu_info()
        cap = int(getattr(info, "vmem_capacity_bytes", cap))
    except Exception:
        pass
    return min(64 * 1024 * 1024, max(16 * 1024 * 1024, cap // 2))


def loglinear_forward(x, weight, bias, *, tile_b=None):
    """LogLinear.forward: x @ weight.T + bias.

    x:      (B, D) float32
    weight: (1, D) float32  (torch nn.Linear(D, 1).weight layout)
    bias:   (1,), (1, 1) or scalar float32
    returns (B, 1) float32
    """
    B, D = x.shape
    w = jnp.asarray(weight, x.dtype).reshape(1, D)
    b = jnp.asarray(bias, jnp.float32).reshape(1, 1)

    itemsize = jnp.dtype(x.dtype).itemsize
    vmem_limit = _vmem_limit_bytes()

    if tile_b is None:
        # ~12 MiB per x buffer: 2 double-buffered x tiles + weight + output +
        # headroom stays under the scoped-VMEM limit on every generation.
        tile_bytes = min(12 * 1024 * 1024, vmem_limit // 2 - (2 << 20))
        rows = tile_bytes // (D * itemsize)
        if rows >= 128:
            tb = (rows // 128) * 128          # lane-dense, unmasked output stores
        else:
            tb = max(8, (rows // 8) * 8)      # huge-D fallback; still (8,128)-legal
        # Never bigger than the (rounded) batch itself.
        tb = min(tb, _round_up(B, 128) if B >= 128 else _round_up(B, 8))
        # Keep >= 2 balanced tiles when possible so the "parallel" batch axis
        # can feed both v7x TensorCores (harmless on single-TC chips).
        half = _round_up(pl.cdiv(B, 2), 128)
        if half < B:
            tb = min(tb, half)
    else:
        # (8,128) rule: the x block's sublane dim must be a multiple of 8.
        tb = max(8, _round_up(int(tile_b), 8))

    n_tiles = pl.cdiv(B, tb)

    cost = pl.CostEstimate(
        flops=2 * B * D,
        transcendentals=0,
        bytes_accessed=itemsize * (B * D + D + B) + 4,   # x read exactly once
    )

    out = pl.pallas_call(
        _loglinear_kernel,
        out_shape=jax.ShapeDtypeStruct((n_tiles, tb), x.dtype),
        grid_spec=pltpu.PrefetchScalarGridSpec(
            num_scalar_prefetch=0,
            grid=(n_tiles,),
            in_specs=[
                pl.BlockSpec((tb, D), lambda i: (i, 0)),             # x tile, unpadded
                pl.BlockSpec((1, D), lambda i: (0, 0)),              # weight (resident)
                pl.BlockSpec(memory_space=pltpu.MemorySpace.SMEM),   # bias scalar
            ],
            out_specs=pl.BlockSpec((1, tb), lambda i: (i, 0)),
        ),
        compiler_params=pltpu.CompilerParams(
            dimension_semantics=("parallel",),
            vmem_limit_bytes=vmem_limit,
        ),
        cost_estimate=cost,
    )(x, w, b)

    # (n_tiles, tb) -> (B, 1); lanes >= B in the last tile came from rows read
    # past the end of x and are discarded here.
    return out.reshape(n_tiles * tb)[:B].reshape(B, 1)


if __name__ == "__main__":
    batch = 8
    embedding_dim = 32

    key = jax.random.PRNGKey(0)
    kx, kw, kb, kx2 = jax.random.split(key, 4)

    # Deterministic "Linear(embedding_dim, 1)" parameters (torch-style layout:
    # weight (1, D), bias (1,); U(-1/sqrt(fan_in), 1/sqrt(fan_in)) range).
    bound = 1.0 / jnp.sqrt(jnp.float32(embedding_dim))
    weight = jax.random.uniform(
        kw, (1, embedding_dim), jnp.float32, minval=-bound, maxval=bound
    )
    bias = jax.random.uniform(kb, (1,), jnp.float32, minval=-bound, maxval=bound)

    x = jax.random.normal(kx, (batch, embedding_dim), jnp.float32)

    out = loglinear_forward(x, weight, bias)
    out = jax.block_until_ready(out)

    # Reference check in plain JAX (nn.Linear semantics: x @ W.T + b).
    ref = x @ weight.T + bias
    assert out.shape == (batch, 1)
    assert jnp.allclose(out, ref, atol=1e-5, rtol=1e-5)

    # Second (still tiny) check exercising the multi-tile grid and the
    # over-read edge block (B not a multiple of the tile).
    x2 = jax.random.normal(kx2, (300, embedding_dim), jnp.float32)
    out2 = jax.block_until_ready(loglinear_forward(x2, weight, bias))
    ref2 = x2 @ weight.T + bias
    assert out2.shape == (300, 1)
    assert jnp.allclose(out2, ref2, atol=1e-5, rtol=1e-5)

    print("KERNEL_OK")
</pallas_src>

<mosaic_0001>
module attributes {stable_mosaic.version = 11 : i64} {
  func.func @_loglinear_kernel(%arg0: i32, %arg1: memref<8x32xf32, #tpu.memory_space<vmem>>, %arg2: memref<1x32xf32, #tpu.memory_space<vmem>>, %arg3: memref<1x1xf32, #tpu.memory_space<smem>>, %arg4: memref<1x8xf32, #tpu.memory_space<vmem>>) attributes {dimension_semantics = [#tpu.dimension_semantics<parallel>], iteration_bounds = array<i64: 1>, scalar_prefetch = 0 : i64, scratch_operands = 0 : i64, tpu.core_type = #tpu.core_type<tc>, window_params = [{transform_indices = @transform_0, window_bounds = array<i64: 8, 32>}, {pipeline_mode = #tpu.pipeline_mode<synchronous>, transform_indices = @transform_1, window_bounds = array<i64: 1, 32>}, {transform_indices = @transform_2, window_bounds = array<i64: 1, 1>}, {transform_indices = @transform_3, window_bounds = array<i64: 1, 8>}]} {
    %c0 = arith.constant 0 : index
    %c0_0 = arith.constant 0 : index
    %0 = vector.load %arg2[%c0, %c0_0] : memref<1x32xf32, #tpu.memory_space<vmem>>, vector<1x32xf32>
    %c0_1 = arith.constant 0 : index
    %c0_2 = arith.constant 0 : index
    %1 = vector.load %arg1[%c0_1, %c0_2] : memref<8x32xf32, #tpu.memory_space<vmem>>, vector<8x32xf32>
    %cst = arith.constant dense<0.000000e+00> : vector<1x8xf32>
    %2 = tpu.matmul %0, %1, %cst {dimension_numbers = #tpu.dot_dimension_numbers<[1], [1], [0], [0], [0, 0, 1, 0], [], []>} : vector<1x32xf32>, vector<8x32xf32>, vector<1x8xf32> -> vector<1x8xf32>
    %c0_3 = arith.constant 0 : index
    %c0_4 = arith.constant 0 : index
    %3 = memref.load %arg3[%c0_3, %c0_4] : memref<1x1xf32, #tpu.memory_space<smem>>
    %4 = vector.broadcast %3 : f32 to vector<1x8xf32>
    %5 = arith.addf %2, %4 : vector<1x8xf32>
    %c0_5 = arith.constant 0 : index
    %c0_6 = arith.constant 0 : index
    %6 = vector.load %arg4[%c0_5, %c0_6] : memref<1x8xf32, #tpu.memory_space<vmem>>, vector<1x8xf32>
    tpu.vector_store %arg4[%c0_5, %c0_6], %5 {strides = array<i32>} : memref<1x8xf32, #tpu.memory_space<vmem>>, vector<1x8xf32>,
    return
  }
  func.func @transform_0(%arg0: i32) -> (i32, i32) {
    %c0_i32 = arith.constant 0 : i32
    %c0_i32_0 = arith.constant 0 : i32
    return %arg0, %c0_i32 : i32, i32
  }
  func.func @transform_1(%arg0: i32) -> (i32, i32) {
    %c0_i32 = arith.constant 0 : i32
    %c0_i32_0 = arith.constant 0 : i32
    %c0_i32_1 = arith.constant 0 : i32
    return %c0_i32, %c0_i32_0 : i32, i32
  }
  func.func @transform_2(%arg0: i32) -> (i32, i32) {
    %c0_i32 = arith.constant 0 : i32
    %c0_i32_0 = arith.constant 0 : i32
    %c0_i32_1 = arith.constant 0 : i32
    return %c0_i32, %c0_i32_0 : i32, i32
  }
  func.func @transform_3(%arg0: i32) -> (i32, i32) {
    %c0_i32 = arith.constant 0 : i32
    %c0_i32_0 = arith.constant 0 : i32
    return %arg0, %c0_i32 : i32, i32
  }
}

</mosaic_0001>

<bundles_post_ra>
// kernel: tpu_custom_call.1
= control target key start
LH: loop header
LB: loop body
LE: loop exit
PB: predicated region body
PF: predicated region fallthrough
CT: control target
= control target key end

     0   :  { %9 = vsyncpa [#allocation4], 0  ;;  %s241_s0 = inlined_call_operand.hbm [shape: f32[8,32], index: 0, kind: input, shape index: {}]   ;;  %s242_s1 = inlined_call_operand.vmem [shape: f32[1,32], index: 1, kind: input, shape index: {}]   ;;  %s243_s2 = inlined_call_operand.<no memory space> [shape: f32[1,1], index: 2, kind: input, shape index: {}]   ;;  %s244_s3 = inlined_call_operand.hbm [shape: f32[1,8], index: 3, kind: output, shape index: {}]  }
   0x1   :  { %10 = vsyncpa [#allocation5], 0  ;;  %s187_s12 = smov [#allocation3]   ;;  %s139_s16 = scalar_lea.hbm %s241_s0, 128 }
   0x2   :  { %s17_s13 = sshll.u32 %s187_s12, 4  ;;  %p140_p0 = scmp.ne.s32.totalorder %s241_s0, %s139_s16  ;;  %s18_s13 = int_to_ptr.vmem [resolvable:$true] %s17_s13 }
   0x3   :  { %p143_p1 = scmp.lt.u32.totalorder %s139_s16, %s241_s0 }
   0x5   :  { %p145_p2 = pnand %p143_p1, %p140_p0 }
   0x7   :  { %148 = shalt.err (!%p145_p2)
}
   0x8   :  { %s149_s21 = scalar_lea.vmem %s18_s13, 128  ;;  %p154_p4 = scmp.lt.s32.totalorder %s18_s13, %s18_s13 }
   0x9   :  { %p150_p3 = scmp.ne.s32.totalorder %s18_s13, %s149_s21  ;;  %p155_p5 = scmp.lt.s32.totalorder %s149_s21, %s149_s21 }
   0xb   :  { %p156_p6 = por %p155_p5, %p154_p4 }
   0xd   :  { %p157_p7 = pnand %p156_p6, %p150_p3 }
   0xf   :  { %160 = shalt.err (!%p157_p7)
}
  0x10   :  { %20 = dma.hbm_to_vmem [thread:$0]  %s241_s0, 128, %s18_s13, [#allocation4]  }
  0x11   :  { %183 = dma.done.wait [#allocation4], 128  }
  0x12   :  { %184 = vsyncadd [#allocation4], 4294967168  ;;  %v188_v0 = vmov 0.0   ;;  %vm189_vm0 = vmmov 0   ;;  %vm32_vm1 = vcmask 261120   ;;  %v29_v1 = vld [vmem:[#allocation3] sm:$0xff]  ;;  %v31_v3 = vstv %s243_s2 }
  0x13   :  { %130 = vmatprep.subr.mxu0 %v188_v0  ;;  %132 = vmatprep.mubr.msk.f32.mxu0 %vm189_vm0, %v188_v0  ;;  %v28_v2 = vld [vmem:[%s242_s1] sm:$0x1]  ;;  %s190_s28 = smov [#allocation6]   ;;  %vm109_vm2 = vcmask 57344  }
  0x14   :  { %131 = vmatpush3.xpose.msk.msra.mxu0 %vm32_vm1, %v29_v1  ;;  %s117_s0 = sshll.u32 %s190_s28, 4  ;;  %s118_s0 = int_to_ptr.vmem [resolvable:$true] %s117_s0 }
  0x15   :  { %s161_s29 = scalar_lea.vmem %s118_s0, 16  ;;  %s165_s30 = scalar_lea.vmem %s118_s0, 32 }
  0x16   :  { %p162_p8 = scmp.ne.s32.totalorder %s118_s0, %s161_s29  ;;  %p166_p9 = scmp.lt.s32.totalorder %s118_s0, %s118_s0 }
  0x17   :  { %133 = vmatmul.mubr.msk.f32.vlgmr.msra.gmra.mrb[0].mxu0 %vm32_vm1, %v28_v2  ;;  %p167_p10 = scmp.lt.s32.totalorder %s165_s30, %s161_s29 }
  0x19   :  { %p168_p11 = por %p167_p10, %p166_p9 }
  0x1b   :  { %p169_p12 = pnand %p168_p11, %p162_p8 }
  0xea   :  { %v105_v4 = vpop.f32.mrb[0].mxu0 }
  0xeb   :  { %v106_v5 = vadd.f32 %v105_v4, %v31_v3  ;;  %v134_v6 = vpop.f32.mrb[1].mxu0 }
  0xed   :  { %110 = vst.msk [vmem:[#allocation6] sm:$0x1] %vm109_vm2, %v106_v5 }
  0xee   :  { %172 = shalt.err (!%p169_p12)
}
  0xef   :  { %s173_s2 = scalar_lea.hbm %s244_s3, 16 }
  0xf0   :  { %p174_p13 = scmp.ne.s32.totalorder %s244_s3, %s173_s2  ;;  %p177_p0 = scmp.lt.u32.totalorder %s173_s2, %s244_s3 }
  0xf2   :  { %p179_p1 = pnand %p177_p0, %p174_p13 }
  0xf4   :  { %182 = shalt.err (!%p179_p1)
}
  0xf5   :  { %120 = dma.vmem_to_hbm [thread:$0]  %s118_s0, 16, %s244_s3, [#allocation5]  }
  0xf6   :  { %185 = dma.done.wait [#allocation5], 16  }
  0xf7   :  { %186 = vsyncadd [#allocation5], 4294967280 }
  0xf8   :  { %124 = vsyncpa [#allocation4], 1 }
  0xf9   :  { %125 = vsyncpa [#allocation5], 1 }

</bundles_post_ra>
